<compile_context>
chip_gen: v7x
topology: tpu7x:2x2x1
jax: 0.10.0
libtpu: 0.0.40
codegen_flags: <defaults>
</compile_context>

<pallas_src>
import functools

import jax
import jax.numpy as jnp
from jax.experimental import pallas as pl
from jax.experimental.pallas import tpu as pltpu


# --------------------------------------------------------------------------
# Fused Pallas kernel: whole UnetSkipConnectionBlock forward, channel-major layout.
# --------------------------------------------------------------------------
def _unet_fused_kernel(x_ref, dw_ref, db_ref, iw_ref, ib_ref,
                       u1a_ref, u1b_ref, u1bias_ref,
                       u0a_ref, u0b_ref, u0bias_ref,
                       o_ref, *, slope):
    f32 = jnp.float32

    # x_ref: (4, C0, tm)  sub-pixel decomposed input; x_ref[0] == the (even,even) pixels,
    #                     i.e. the stride-2 downsampled input (stride folded into layout).
    x00 = x_ref[0]                                                  # (C0, tm)

    # ---- outer.down : 1x1 conv (stride 2) + LeakyReLU(0.2) ----
    d = jnp.dot(dw_ref[...], x00, preferred_element_type=f32) + db_ref[...]
    d = jnp.where(d > 0, d, slope * d)                              # (C1, tm)

    # ---- innermost.inner : 1x1 conv + LeakyReLU(0.2) ----
    y = jnp.dot(iw_ref[...], d, preferred_element_type=f32) + ib_ref[...]
    y = jnp.where(y > 0, y, slope * y)                              # (C2, tm)

    # ---- innermost.up((y, d)) : concat + 1x1 conv + ReLU  (concat folded into 2 matmuls)
    u = (jnp.dot(u1a_ref[...], y, preferred_element_type=f32)
         + jnp.dot(u1b_ref[...], d, preferred_element_type=f32)
         + u1bias_ref[...])
    u = jnp.maximum(u, 0.0)                                         # (C1, tm)

    # ---- outer.up((u_inner, x)) : 2x nearest upsample + concat + 1x1 conv (linear) ----
    # Nearest upsample commutes with the 1x1 conv: apply up0_wa once at low resolution,
    # then add the per-sub-pixel skip term up0_wb @ x_sub[k].
    base = jnp.dot(u0a_ref[...], u, preferred_element_type=f32) + u0bias_ref[...]
    for k in range(4):                       # the 4 sub-pixel positions of the 2x upsample
        o_ref[k] = (base + jnp.dot(u0b_ref[...], x_ref[k],
                                   preferred_element_type=f32)).astype(o_ref.dtype)


def _choose_tm(md, max_tm=2048):
    """Pick a lane-dim tile: multiple of 128 dividing md; prefer >=2 grid steps (v7x 2 TCs)."""
    # TODO(synk): pad M to a multiple of 128 instead of asserting, for arbitrary N*H*W.
    assert md % 128 == 0, "flattened downsampled spatial size must be a multiple of 128"
    nb = md // 128
    if nb == 1:
        return 128
    best = 128
    for k in range(1, nb):                   # keep grid >= 2 steps
        if nb % k == 0 and 128 * k <= max_tm:
            best = 128 * k
    return best


def _fused_forward(x_sub, pT, *, c_out, tm):
    _, c0, md = x_sub.shape
    c1 = pT["down_wt"].shape[0]
    c2 = pT["inner_wt"].shape[0]
    full = lambda i: (0, 0)
    return pl.pallas_call(
        functools.partial(_unet_fused_kernel, slope=0.2),
        out_shape=jax.ShapeDtypeStruct((4, c_out, md), x_sub.dtype),
        grid=(md // tm,),
        in_specs=[
            pl.BlockSpec((4, c0, tm), lambda i: (0, 0, i)),   # x_sub, tiled on lane axis
            pl.BlockSpec((c1, c0), full),                     # down_wt
            pl.BlockSpec((c1, 1), full),                      # down_bt
            pl.BlockSpec((c2, c1), full),                     # inner_wt
            pl.BlockSpec((c2, 1), full),                      # inner_bt
            pl.BlockSpec((c1, c2), full),                     # up1_wat
            pl.BlockSpec((c1, c1), full),                     # up1_wbt
            pl.BlockSpec((c1, 1), full),                      # up1_bt
            pl.BlockSpec((c_out, c1), full),                  # up0_wat
            pl.BlockSpec((c_out, c0), full),                  # up0_wbt
            pl.BlockSpec((c_out, 1), full),                   # up0_bt
        ],
        out_specs=pl.BlockSpec((4, c_out, tm), lambda i: (0, 0, i)),
        compiler_params=pltpu.CompilerParams(dimension_semantics=("parallel",)),
    )(x_sub, pT["down_wt"], pT["down_bt"], pT["inner_wt"], pT["inner_bt"],
      pT["up1_wat"], pT["up1_wbt"], pT["up1_bt"],
      pT["up0_wat"], pT["up0_wbt"], pT["up0_bt"])


# --------------------------------------------------------------------------
# Module parameters (same shapes / semantics as before) and forward wrapper.
# --------------------------------------------------------------------------
def init_params(key, c0=4, c1=8, c2=16, c_out=4, dtype=jnp.float32):
    ks = jax.random.split(key, 8)
    def w(k, shape):
        return (jax.random.normal(k, shape, dtype) * 0.1).astype(dtype)
    return {
        # outer.down : c0 -> c1 (stride-2 1x1 conv)
        "down_w": w(ks[0], (c0, c1)), "down_b": w(ks[1], (1, c1)),
        # inner.inner : c1 -> c2
        "inner_w": w(ks[2], (c1, c2)), "inner_b": w(ks[3], (1, c2)),
        # inner.up : concat(c2, c1) -> c1
        "up1_wa": w(ks[4], (c2, c1)), "up1_wb": w(ks[5], (c1, c1)),
        "up1_b": w(ks[6], (1, c1)),
        # outer.up : concat(c1, c0) -> c_out
        "up0_wa": w(ks[7], (c1, c_out)),
        "up0_wb": w(jax.random.fold_in(key, 100), (c0, c_out)),
        "up0_b": w(jax.random.fold_in(key, 101), (1, c_out)),
    }


def unet_skip_block_forward(x_nchw, params):
    """Forward of the 2-level UnetSkipConnectionBlock.  Input/output NCHW (PyTorch layout)."""
    N, C0, H, W = x_nchw.shape
    assert H % 2 == 0 and W % 2 == 0
    h2, w2 = H // 2, W // 2
    md = N * h2 * w2
    c_out = params["up0_wa"].shape[1]

    # Sub-pixel decomposition (pure layout plumbing -> lane-dense M axis, and it folds
    # both the stride-2 downsample and the 2x nearest upsample into indexing):
    #   x_sub[2a+b, c, (n*h2+h)*w2+w] = x[n, c, 2h+a, 2w+b]
    x_sub = x_nchw.reshape(N, C0, h2, 2, w2, 2)
    x_sub = jnp.transpose(x_sub, (3, 5, 1, 0, 2, 4)).reshape(4, C0, md)

    # Channel-major (transposed) parameters so the kernel computes (Cout, M) = W^T @ X^T.
    pT = {
        "down_wt": params["down_w"].T,  "down_bt": params["down_b"].T,
        "inner_wt": params["inner_w"].T, "inner_bt": params["inner_b"].T,
        "up1_wat": params["up1_wa"].T,  "up1_wbt": params["up1_wb"].T,
        "up1_bt": params["up1_b"].T,
        "up0_wat": params["up0_wa"].T,  "up0_wbt": params["up0_wb"].T,
        "up0_bt": params["up0_b"].T,
    }

    tm = _choose_tm(md)
    out_sub = _fused_forward(x_sub, pT, c_out=c_out, tm=tm)        # (4, c_out, md)

    # Inverse sub-pixel: out[n, co, 2h+a, 2w+b] = out_sub[2a+b, co, (n*h2+h)*w2+w]
    out = out_sub.reshape(2, 2, c_out, N, h2, w2)
    out = jnp.transpose(out, (3, 2, 4, 0, 5, 1)).reshape(N, c_out, H, W)
    return out


# Pure-JAX reference of the same dataflow for a correctness check.
def _reference(x_nchw, p):
    def lrelu(v): return jnp.where(v > 0, v, 0.2 * v)
    x = jnp.transpose(x_nchw, (0, 2, 3, 1))
    N, H, W, C0 = x.shape
    xd = x[:, ::2, ::2, :].reshape(-1, C0)
    d = lrelu(xd @ p["down_w"] + p["down_b"])
    y = lrelu(d @ p["inner_w"] + p["inner_b"])
    u_inner = jnp.maximum(
        jnp.concatenate([y, d], -1) @ jnp.concatenate([p["up1_wa"], p["up1_wb"]], 0)
        + p["up1_b"], 0.0)
    u = u_inner.reshape(N, H // 2, W // 2, -1)
    u = jnp.repeat(jnp.repeat(u, 2, axis=1), 2, axis=2).reshape(-1, u_inner.shape[-1])
    out = (jnp.concatenate([u, x.reshape(-1, C0)], -1)
           @ jnp.concatenate([p["up0_wa"], p["up0_wb"]], 0) + p["up0_b"])
    return jnp.transpose(out.reshape(N, H, W, -1), (0, 3, 1, 2))


if __name__ == "__main__":
    key = jax.random.PRNGKey(0)
    kx, kp = jax.random.split(key)
    x = jax.random.normal(kx, (2, 4, 16, 16), jnp.float32)   # NCHW, like PyTorch
    params = init_params(kp, c0=4, c1=8, c2=16, c_out=4)

    out = jax.jit(unet_skip_block_forward)(x, params)
    out = jax.block_until_ready(out)

    ref = _reference(x, params)
    assert out.shape == (2, 4, 16, 16), out.shape
    assert jnp.allclose(out, ref, atol=1e-5, rtol=1e-5), "mismatch vs reference"
    print("KERNEL_OK")
</pallas_src>

<mosaic_0001>
module attributes {stable_mosaic.version = 11 : i64} {
  func.func @_unet_fused_kernel(%arg0: i32, %arg1: memref<4x4x128xf32, #tpu.memory_space<vmem>>, %arg2: memref<8x4xf32, #tpu.memory_space<vmem>>, %arg3: memref<8x1xf32, #tpu.memory_space<vmem>>, %arg4: memref<16x8xf32, #tpu.memory_space<vmem>>, %arg5: memref<16x1xf32, #tpu.memory_space<vmem>>, %arg6: memref<8x16xf32, #tpu.memory_space<vmem>>, %arg7: memref<8x8xf32, #tpu.memory_space<vmem>>, %arg8: memref<8x1xf32, #tpu.memory_space<vmem>>, %arg9: memref<4x8xf32, #tpu.memory_space<vmem>>, %arg10: memref<4x4xf32, #tpu.memory_space<vmem>>, %arg11: memref<4x1xf32, #tpu.memory_space<vmem>>, %arg12: memref<4x4x128xf32, #tpu.memory_space<vmem>>) attributes {dimension_semantics = [#tpu.dimension_semantics<parallel>], iteration_bounds = array<i64: 1>, scalar_prefetch = 0 : i64, scratch_operands = 0 : i64, tpu.core_type = #tpu.core_type<tc>, window_params = [{transform_indices = @transform_0, window_bounds = array<i64: 4, 4, 128>}, {pipeline_mode = #tpu.pipeline_mode<synchronous>, transform_indices = @transform_1, window_bounds = array<i64: 8, 4>}, {pipeline_mode = #tpu.pipeline_mode<synchronous>, transform_indices = @transform_2, window_bounds = array<i64: 8, 1>}, {pipeline_mode = #tpu.pipeline_mode<synchronous>, transform_indices = @transform_3, window_bounds = array<i64: 16, 8>}, {pipeline_mode = #tpu.pipeline_mode<synchronous>, transform_indices = @transform_4, window_bounds = array<i64: 16, 1>}, {pipeline_mode = #tpu.pipeline_mode<synchronous>, transform_indices = @transform_5, window_bounds = array<i64: 8, 16>}, {pipeline_mode = #tpu.pipeline_mode<synchronous>, transform_indices = @transform_6, window_bounds = array<i64: 8, 8>}, {pipeline_mode = #tpu.pipeline_mode<synchronous>, transform_indices = @transform_7, window_bounds = array<i64: 8, 1>}, {pipeline_mode = #tpu.pipeline_mode<synchronous>, transform_indices = @transform_8, window_bounds = array<i64: 4, 8>}, {pipeline_mode = #tpu.pipeline_mode<synchronous>, transform_indices = @transform_9, window_bounds = array<i64: 4, 4>}, {pipeline_mode = #tpu.pipeline_mode<synchronous>, transform_indices = @transform_10, window_bounds = array<i64: 4, 1>}, {transform_indices = @transform_11, window_bounds = array<i64: 4, 4, 128>}]} {
    %c0 = arith.constant 0 : index
    %c0_0 = arith.constant 0 : index
    %c0_1 = arith.constant 0 : index
    %0 = vector.load %arg1[%c0, %c0_0, %c0_1] : memref<4x4x128xf32, #tpu.memory_space<vmem>>, vector<1x4x128xf32>
    %1 = vector.shape_cast %0 : vector<1x4x128xf32> to vector<4x128xf32>
    %c0_2 = arith.constant 0 : index
    %c0_3 = arith.constant 0 : index
    %2 = vector.load %arg2[%c0_2, %c0_3] : memref<8x4xf32, #tpu.memory_space<vmem>>, vector<8x4xf32>
    %cst = arith.constant dense<0.000000e+00> : vector<8x128xf32>
    %3 = tpu.matmul %2, %1, %cst {dimension_numbers = #tpu.dot_dimension_numbers<[1], [0], [0], [1], [0, 0, 1, 1], [], []>} : vector<8x4xf32>, vector<4x128xf32>, vector<8x128xf32> -> vector<8x128xf32>
    %c0_4 = arith.constant 0 : index
    %c0_5 = arith.constant 0 : index
    %4 = vector.load %arg3[%c0_4, %c0_5] : memref<8x1xf32, #tpu.memory_space<vmem>>, vector<8x1xf32>
    %5 = vector.broadcast %4 : vector<8x1xf32> to vector<8x128xf32>
    %6 = arith.addf %3, %5 : vector<8x128xf32>
    %cst_6 = arith.constant 0.000000e+00 : f32
    %7 = vector.broadcast %cst_6 : f32 to vector<8x128xf32>
    %8 = arith.cmpf ogt, %6, %7 : vector<8x128xf32>
    %cst_7 = arith.constant 2.000000e-01 : f32
    %9 = vector.broadcast %cst_7 : f32 to vector<8x128xf32>
    %10 = arith.mulf %9, %6 : vector<8x128xf32>
    %11 = arith.select %8, %6, %10 : vector<8x128xi1>, vector<8x128xf32>
    %c0_8 = arith.constant 0 : index
    %c0_9 = arith.constant 0 : index
    %12 = vector.load %arg4[%c0_8, %c0_9] : memref<16x8xf32, #tpu.memory_space<vmem>>, vector<16x8xf32>
    %cst_10 = arith.constant dense<0.000000e+00> : vector<16x128xf32>
    %13 = tpu.matmul %12, %11, %cst_10 {dimension_numbers = #tpu.dot_dimension_numbers<[1], [0], [0], [1], [0, 0, 1, 1], [], []>} : vector<16x8xf32>, vector<8x128xf32>, vector<16x128xf32> -> vector<16x128xf32>
    %c0_11 = arith.constant 0 : index
    %c0_12 = arith.constant 0 : index
    %14 = vector.load %arg5[%c0_11, %c0_12] : memref<16x1xf32, #tpu.memory_space<vmem>>, vector<16x1xf32>
    %15 = vector.broadcast %14 : vector<16x1xf32> to vector<16x128xf32>
    %16 = arith.addf %13, %15 : vector<16x128xf32>
    %cst_13 = arith.constant 0.000000e+00 : f32
    %17 = vector.broadcast %cst_13 : f32 to vector<16x128xf32>
    %18 = arith.cmpf ogt, %16, %17 : vector<16x128xf32>
    %cst_14 = arith.constant 2.000000e-01 : f32
    %19 = vector.broadcast %cst_14 : f32 to vector<16x128xf32>
    %20 = arith.mulf %19, %16 : vector<16x128xf32>
    %21 = arith.select %18, %16, %20 : vector<16x128xi1>, vector<16x128xf32>
    %c0_15 = arith.constant 0 : index
    %c0_16 = arith.constant 0 : index
    %22 = vector.load %arg6[%c0_15, %c0_16] : memref<8x16xf32, #tpu.memory_space<vmem>>, vector<8x16xf32>
    %cst_17 = arith.constant dense<0.000000e+00> : vector<8x128xf32>
    %23 = tpu.matmul %22, %21, %cst_17 {dimension_numbers = #tpu.dot_dimension_numbers<[1], [0], [0], [1], [0, 0, 1, 1], [], []>} : vector<8x16xf32>, vector<16x128xf32>, vector<8x128xf32> -> vector<8x128xf32>
    %c0_18 = arith.constant 0 : index
    %c0_19 = arith.constant 0 : index
    %24 = vector.load %arg7[%c0_18, %c0_19] : memref<8x8xf32, #tpu.memory_space<vmem>>, vector<8x8xf32>
    %cst_20 = arith.constant dense<0.000000e+00> : vector<8x128xf32>
    %25 = tpu.matmul %24, %11, %cst_20 {dimension_numbers = #tpu.dot_dimension_numbers<[1], [0], [0], [1], [0, 0, 1, 1], [], []>} : vector<8x8xf32>, vector<8x128xf32>, vector<8x128xf32> -> vector<8x128xf32>
    %26 = arith.addf %23, %25 : vector<8x128xf32>
    %c0_21 = arith.constant 0 : index
    %c0_22 = arith.constant 0 : index
    %27 = vector.load %arg8[%c0_21, %c0_22] : memref<8x1xf32, #tpu.memory_space<vmem>>, vector<8x1xf32>
    %28 = vector.broadcast %27 : vector<8x1xf32> to vector<8x128xf32>
    %29 = arith.addf %26, %28 : vector<8x128xf32>
    %cst_23 = arith.constant 0.000000e+00 : f32
    %30 = vector.broadcast %cst_23 : f32 to vector<8x128xf32>
    %31 = arith.maximumf %29, %30 : vector<8x128xf32>
    %c0_24 = arith.constant 0 : index
    %c0_25 = arith.constant 0 : index
    %32 = vector.load %arg9[%c0_24, %c0_25] : memref<4x8xf32, #tpu.memory_space<vmem>>, vector<4x8xf32>
    %cst_26 = arith.constant dense<0.000000e+00> : vector<4x128xf32>
    %33 = tpu.matmul %32, %31, %cst_26 {dimension_numbers = #tpu.dot_dimension_numbers<[1], [0], [0], [1], [0, 0, 1, 1], [], []>} : vector<4x8xf32>, vector<8x128xf32>, vector<4x128xf32> -> vector<4x128xf32>
    %c0_27 = arith.constant 0 : index
    %c0_28 = arith.constant 0 : index
    %34 = vector.load %arg11[%c0_27, %c0_28] : memref<4x1xf32, #tpu.memory_space<vmem>>, vector<4x1xf32>
    %35 = vector.broadcast %34 : vector<4x1xf32> to vector<4x128xf32>
    %36 = arith.addf %33, %35 : vector<4x128xf32>
    %c0_29 = arith.constant 0 : index
    %c0_30 = arith.constant 0 : index
    %37 = vector.load %arg10[%c0_29, %c0_30] : memref<4x4xf32, #tpu.memory_space<vmem>>, vector<4x4xf32>
    %c0_31 = arith.constant 0 : index
    %c0_32 = arith.constant 0 : index
    %c0_33 = arith.constant 0 : index
    %38 = vector.load %arg1[%c0_31, %c0_32, %c0_33] : memref<4x4x128xf32, #tpu.memory_space<vmem>>, vector<1x4x128xf32>
    %39 = vector.shape_cast %38 : vector<1x4x128xf32> to vector<4x128xf32>
    %cst_34 = arith.constant dense<0.000000e+00> : vector<4x128xf32>
    %40 = tpu.matmul %37, %39, %cst_34 {dimension_numbers = #tpu.dot_dimension_numbers<[1], [0], [0], [1], [0, 0, 1, 1], [], []>} : vector<4x4xf32>, vector<4x128xf32>, vector<4x128xf32> -> vector<4x128xf32>
    %41 = arith.addf %36, %40 : vector<4x128xf32>
    %c0_35 = arith.constant 0 : index
    %c0_36 = arith.constant 0 : index
    %c0_37 = arith.constant 0 : index
    %42 = vector.load %arg12[%c0_35, %c0_36, %c0_37] : memref<4x4x128xf32, #tpu.memory_space<vmem>>, vector<1x4x128xf32>
    %43 = vector.shape_cast %42 : vector<1x4x128xf32> to vector<4x128xf32>
    %44 = vector.shape_cast %41 : vector<4x128xf32> to vector<1x4x128xf32>
    tpu.vector_store %arg12[%c0_35, %c0_36, %c0_37], %44 {strides = array<i32>} : memref<4x4x128xf32, #tpu.memory_space<vmem>>, vector<1x4x128xf32>,
    %c0_38 = arith.constant 0 : index
    %c0_39 = arith.constant 0 : index
    %45 = vector.load %arg10[%c0_38, %c0_39] : memref<4x4xf32, #tpu.memory_space<vmem>>, vector<4x4xf32>
    %c1 = arith.constant 1 : index
    %c0_40 = arith.constant 0 : index
    %c0_41 = arith.constant 0 : index
    %46 = vector.load %arg1[%c1, %c0_40, %c0_41] : memref<4x4x128xf32, #tpu.memory_space<vmem>>, vector<1x4x128xf32>
    %47 = vector.shape_cast %46 : vector<1x4x128xf32> to vector<4x128xf32>
    %cst_42 = arith.constant dense<0.000000e+00> : vector<4x128xf32>
    %48 = tpu.matmul %45, %47, %cst_42 {dimension_numbers = #tpu.dot_dimension_numbers<[1], [0], [0], [1], [0, 0, 1, 1], [], []>} : vector<4x4xf32>, vector<4x128xf32>, vector<4x128xf32> -> vector<4x128xf32>
    %49 = arith.addf %36, %48 : vector<4x128xf32>
    %c1_43 = arith.constant 1 : index
    %c0_44 = arith.constant 0 : index
    %c0_45 = arith.constant 0 : index
    %50 = vector.load %arg12[%c1_43, %c0_44, %c0_45] : memref<4x4x128xf32, #tpu.memory_space<vmem>>, vector<1x4x128xf32>
    %51 = vector.shape_cast %50 : vector<1x4x128xf32> to vector<4x128xf32>
    %52 = vector.shape_cast %49 : vector<4x128xf32> to vector<1x4x128xf32>
    tpu.vector_store %arg12[%c1_43, %c0_44, %c0_45], %52 {strides = array<i32>} : memref<4x4x128xf32, #tpu.memory_space<vmem>>, vector<1x4x128xf32>,
    %c0_46 = arith.constant 0 : index
    %c0_47 = arith.constant 0 : index
    %53 = vector.load %arg10[%c0_46, %c0_47] : memref<4x4xf32, #tpu.memory_space<vmem>>, vector<4x4xf32>
    %c2 = arith.constant 2 : index
    %c0_48 = arith.constant 0 : index
    %c0_49 = arith.constant 0 : index
    %54 = vector.load %arg1[%c2, %c0_48, %c0_49] : memref<4x4x128xf32, #tpu.memory_space<vmem>>, vector<1x4x128xf32>
    %55 = vector.shape_cast %54 : vector<1x4x128xf32> to vector<4x128xf32>
    %cst_50 = arith.constant dense<0.000000e+00> : vector<4x128xf32>
    %56 = tpu.matmul %53, %55, %cst_50 {dimension_numbers = #tpu.dot_dimension_numbers<[1], [0], [0], [1], [0, 0, 1, 1], [], []>} : vector<4x4xf32>, vector<4x128xf32>, vector<4x128xf32> -> vector<4x128xf32>
    %57 = arith.addf %36, %56 : vector<4x128xf32>
    %c2_51 = arith.constant 2 : index
    %c0_52 = arith.constant 0 : index
    %c0_53 = arith.constant 0 : index
    %58 = vector.load %arg12[%c2_51, %c0_52, %c0_53] : memref<4x4x128xf32, #tpu.memory_space<vmem>>, vector<1x4x128xf32>
    %59 = vector.shape_cast %58 : vector<1x4x128xf32> to vector<4x128xf32>
    %60 = vector.shape_cast %57 : vector<4x128xf32> to vector<1x4x128xf32>
    tpu.vector_store %arg12[%c2_51, %c0_52, %c0_53], %60 {strides = array<i32>} : memref<4x4x128xf32, #tpu.memory_space<vmem>>, vector<1x4x128xf32>,
    %c0_54 = arith.constant 0 : index
    %c0_55 = arith.constant 0 : index
    %61 = vector.load %arg10[%c0_54, %c0_55] : memref<4x4xf32, #tpu.memory_space<vmem>>, vector<4x4xf32>
    %c3 = arith.constant 3 : index
    %c0_56 = arith.constant 0 : index
    %c0_57 = arith.constant 0 : index
    %62 = vector.load %arg1[%c3, %c0_56, %c0_57] : memref<4x4x128xf32, #tpu.memory_space<vmem>>, vector<1x4x128xf32>
    %63 = vector.shape_cast %62 : vector<1x4x128xf32> to vector<4x128xf32>
    %cst_58 = arith.constant dense<0.000000e+00> : vector<4x128xf32>
    %64 = tpu.matmul %61, %63, %cst_58 {dimension_numbers = #tpu.dot_dimension_numbers<[1], [0], [0], [1], [0, 0, 1, 1], [], []>} : vector<4x4xf32>, vector<4x128xf32>, vector<4x128xf32> -> vector<4x128xf32>
    %65 = arith.addf %36, %64 : vector<4x128xf32>
    %c3_59 = arith.constant 3 : index
    %c0_60 = arith.constant 0 : index
    %c0_61 = arith.constant 0 : index
    %66 = vector.load %arg12[%c3_59, %c0_60, %c0_61] : memref<4x4x128xf32, #tpu.memory_space<vmem>>, vector<1x4x128xf32>
    %67 = vector.shape_cast %66 : vector<1x4x128xf32> to vector<4x128xf32>
    %68 = vector.shape_cast %65 : vector<4x128xf32> to vector<1x4x128xf32>
    tpu.vector_store %arg12[%c3_59, %c0_60, %c0_61], %68 {strides = array<i32>} : memref<4x4x128xf32, #tpu.memory_space<vmem>>, vector<1x4x128xf32>,
    return
  }
  func.func @transform_0(%arg0: i32) -> (i32, i32, i32) {
    %c0_i32 = arith.constant 0 : i32
    %c0_i32_0 = arith.constant 0 : i32
    %c0_i32_1 = arith.constant 0 : i32
    return %c0_i32, %c0_i32_0, %arg0 : i32, i32, i32
  }
  func.func @transform_1(%arg0: i32) -> (i32, i32) {
    %c0_i32 = arith.constant 0 : i32
    %c0_i32_0 = arith.constant 0 : i32
    %c0_i32_1 = arith.constant 0 : i32
    return %c0_i32, %c0_i32_0 : i32, i32
  }
  func.func @transform_2(%arg0: i32) -> (i32, i32) {
    %c0_i32 = arith.constant 0 : i32
    %c0_i32_0 = arith.constant 0 : i32
    %c0_i32_1 = arith.constant 0 : i32
    return %c0_i32, %c0_i32_0 : i32, i32
  }
  func.func @transform_3(%arg0: i32) -> (i32, i32) {
    %c0_i32 = arith.constant 0 : i32
    %c0_i32_0 = arith.constant 0 : i32
    %c0_i32_1 = arith.constant 0 : i32
    return %c0_i32, %c0_i32_0 : i32, i32
  }
  func.func @transform_4(%arg0: i32) -> (i32, i32) {
    %c0_i32 = arith.constant 0 : i32
    %c0_i32_0 = arith.constant 0 : i32
    %c0_i32_1 = arith.constant 0 : i32
    return %c0_i32, %c0_i32_0 : i32, i32
  }
  func.func @transform_5(%arg0: i32) -> (i32, i32) {
    %c0_i32 = arith.constant 0 : i32
    %c0_i32_0 = arith.constant 0 : i32
    %c0_i32_1 = arith.constant 0 : i32
    return %c0_i32, %c0_i32_0 : i32, i32
  }
  func.func @transform_6(%arg0: i32) -> (i32, i32) {
    %c0_i32 = arith.constant 0 : i32
    %c0_i32_0 = arith.constant 0 : i32
    %c0_i32_1 = arith.constant 0 : i32
    return %c0_i32, %c0_i32_0 : i32, i32
  }
  func.func @transform_7(%arg0: i32) -> (i32, i32) {
    %c0_i32 = arith.constant 0 : i32
    %c0_i32_0 = arith.constant 0 : i32
    %c0_i32_1 = arith.constant 0 : i32
    return %c0_i32, %c0_i32_0 : i32, i32
  }
  func.func @transform_8(%arg0: i32) -> (i32, i32) {
    %c0_i32 = arith.constant 0 : i32
    %c0_i32_0 = arith.constant 0 : i32
    %c0_i32_1 = arith.constant 0 : i32
    return %c0_i32, %c0_i32_0 : i32, i32
  }
  func.func @transform_9(%arg0: i32) -> (i32, i32) {
    %c0_i32 = arith.constant 0 : i32
    %c0_i32_0 = arith.constant 0 : i32
    %c0_i32_1 = arith.constant 0 : i32
    return %c0_i32, %c0_i32_0 : i32, i32
  }
  func.func @transform_10(%arg0: i32) -> (i32, i32) {
    %c0_i32 = arith.constant 0 : i32
    %c0_i32_0 = arith.constant 0 : i32
    %c0_i32_1 = arith.constant 0 : i32
    return %c0_i32, %c0_i32_0 : i32, i32
  }
  func.func @transform_11(%arg0: i32) -> (i32, i32, i32) {
    %c0_i32 = arith.constant 0 : i32
    %c0_i32_0 = arith.constant 0 : i32
    %c0_i32_1 = arith.constant 0 : i32
    return %c0_i32, %c0_i32_0, %arg0 : i32, i32, i32
  }
}

</mosaic_0001>

<bundles_post_ra>
// kernel: unet_skip_block_forward.1
= control target key start
LH: loop header
LB: loop body
LE: loop exit
PB: predicated region body
PF: predicated region fallthrough
CT: control target
= control target key end

     0   :  { %vm50_vm0 = vcmask 1043456   ;;  %vm46_vm1 = vcmask 31744   ;;  %v889_v0 = vmov 0.0   ;;  %vm890_vm2 = vmmov 0   ;;  %s1063_s0 = inlined_call_operand.vmem [shape: f32[4,4,128], index: 0, kind: input, shape index: {}]   ;;  %s1064_s1 = inlined_call_operand.vmem [shape: f32[8,4], index: 1, kind: input, shape index: {}]   ;;  %s1065_s2 = inlined_call_operand.vmem [shape: f32[8,1], index: 2, kind: input, shape index: {}]   ;;  %s1066_s4 = inlined_call_operand.vmem [shape: f32[16,1], index: 4, kind: input, shape index: {}]   ;;  %s1067_s10 = inlined_call_operand.vmem [shape: f32[4,1], index: 10, kind: input, shape index: {}]   ;;  %s1068_s3 = inlined_call_operand.vmem [shape: f32[16,8], index: 3, kind: input, shape index: {}]   ;;  %s1069_s7 = inlined_call_operand.vmem [shape: f32[8,1], index: 7, kind: input, shape index: {}]   ;;  %s1070_s6 = inlined_call_operand.vmem [shape: f32[8,8], index: 6, kind: input, shape index: {}]   ;;  %s1071_s5 = inlined_call_operand.vmem [shape: f32[8,16], index: 5, kind: input, shape index: {}]   ;;  %s1072_s9 = inlined_call_operand.vmem [shape: f32[4,4], index: 9, kind: input, shape index: {}]   ;;  %s1073_s8 = inlined_call_operand.vmem [shape: f32[4,8], index: 8, kind: input, shape index: {}]   ;;  %s1074_s11 = inlined_call_operand.vmem [shape: f32[4,4,128], index: 11, kind: output, shape index: {}]  }
   0x1   :  { %833 = vmatprep.subr.mxu0 %v889_v0  ;;  %v957_v1 = vld [vmem:[%s1063_s0] sm:$0xf]  ;;  %835 = vmatprep.mubr.msk.f32.mxu0 %vm890_vm2, %v889_v0  ;;  %v891_v4 = vmov 0   ;;  %vm141_vm3 = vcmask 64512   ;;  %v130_v8 = vld [vmem:[%s1066_s4 + $0x8] sm:$0xff]  ;;  %v892_v17 = vmov 0.0|0.0  }
   0x2   :  { %v39_v2 = vld [vmem:[%s1064_s1] sm:$0xff]  ;;  %834 = vmatpush3.msk.msra.mxu0 %vm50_vm0, %v957_v1  ;;  %887 = vset.pattern.permute.xlu0 %v891_v4  ;;  %v128_v16 = vld [vmem:[%s1068_s3 + $0x8] sm:$0xff]  ;;  %vm304_vm7 = vcmask 130048  }
   0x3   :  { %v40_v3 = vld [vmem:[%s1065_s2] sm:$0xff]  ;;  %836 = vmatmul.mubr.msk.f32.vlgmr.msra.gmra.mrb[0].mxu0 %vm46_vm1, %v39_v2  ;;  %843 = vmatprep.subr.mxu0 %v889_v0  ;;  %v805_v34 = vld [vmem:[%s1063_s0 + $0x8] sm:$0xf]  ;;  %v809_v45 = vld [vmem:[%s1063_s0 + $0xc] sm:$0xf] }
   0x4   :  { %43 = vperm.xlu0 %887, %v40_v3   ;;  %v129_v5 = vld [vmem:[%s1066_s4] sm:$0xff]  ;;  %888 = vset.pattern.permute.xlu1 %v891_v4 }
   0x5   :  { %845 = vmatprep.mubr.msk.f32.mxu0 %vm890_vm2, %v889_v0  ;;  %v387_v6 = vld [vmem:[%s1067_s10] sm:$0xf]  ;;  %138 = vperm.xlu1 %888, %v130_v8   ;;  %v801_v43 = vld [vmem:[%s1063_s0 + $0x4] sm:$0xf] }
   0x6   :  { %v127_v7 = vld [vmem:[%s1068_s3] sm:$0xff] }
   0x7   :  { %840 = vmatprep.mubr.msk.f32.mxu1 %vm141_vm3, %v127_v7  ;;  %v378_v9 = vld [vmem:[%s1069_s7] sm:$0xff] }
   0x8   :  { %133 = vperm.xlu0 %887, %v129_v5   ;;  %v230_v18 = vld [vmem:[%s1070_s6] sm:$0xff] }
   0x9   :  { %381 = vperm.xlu1 %888, %v378_v9   ;;  %v229_v30 = vld [vmem:[%s1071_s5] sm:$0xff] }
   0xa   :  { %v466_v33 = vld [vmem:[%s1072_s9] sm:$0xf] }
   0xb   :  { %v624_v35 = vld [vmem:[%s1072_s9] sm:$0xf] }
   0xc   :  { %390 = vperm.xlu0 %887, %v387_v6   ;;  %v386_v42 = vld [vmem:[%s1073_s8] sm:$0xf] }
   0xd   :  { %v542_v44 = vld [vmem:[%s1072_s9] sm:$0xf] }
   0xe   :  { %v706_v46 = vld [vmem:[%s1072_s9] sm:$0xf] }
  0x83   :  { %v44_v10 = vpop.permute.xlu0 %43 }
  0x84   :  { %v139_v19 = vpop.permute.xlu1 %138 }
  0x87   :  { %v134_v21 = vpop.permute.xlu0 %133 }
  0x88   :  { %v382_v39 = vpop.permute.xlu1 %381 }
  0x8b   :  { %v391_v51 = vpop.permute.xlu0 %390 }
  0xd6   :  { %v120_v11 = vpop.f32.mrb[0].mxu0 }
  0xd7   :  { %v121_v12 = vadd.f32 %v120_v11, %v44_v10  ;;  %v837_v13 = vpop.f32.mrb[1].mxu0 }
  0xd9   :  { %v125_v14 = vmul.f32 0.2, %v121_v12  ;;  %vm124_vm4 = vcmp.gt.f32.partialorder %v121_v12, 0.0 }
  0xdb   :  { %v126_v15 = vsel %vm124_vm4, %v121_v12, %v125_v14 }
  0xdc   :  { %838 = vmatprep.subr.mxu1 %v126_v15  ;;  %844 = vmatpush3.msra.mxu0 %v126_v15 }
  0xdd   :  { %839 = vmatpush3.msra.mxu1 %v126_v15  ;;  %855 = vmatprep.subr.mxu0 %v889_v0 }
  0xde   :  { %841 = vmatmul.mubr.msk.f32.vlgmr.msra.gmra.mrb[0].mxu1 %vm141_vm3, %v128_v16  ;;  %880 = vmatprep.subr.bf16.mxu1 %v892_v17 }
  0xdf   :  { %852 = vmatprep.mubr.msk.f32.mxu1 %vm890_vm2, %v889_v0  ;;  %846 = vmatmul.mubr.msk.f32.vlgmr.msra.gmra.mrb[2].mxu0 %vm141_vm3, %v230_v18 }
  0xe0   :  { %857 = vmatprep.mubr.msk.f32.mxu0 %vm890_vm2, %v889_v0 }
 0x1b1   :  { %v842_v20 = vpop.f32.mrb[0].mxu1 }
 0x1b2   :  { %v220_v22 = vadd.f32 %v842_v20, %v139_v19  ;;  %v214_v23 = vpop.f32.mrb[1].mxu1  ;;  %v300_v31 = vpop.f32.mrb[2].mxu0 }
 0x1b3   :  { %v215_v24 = vadd.f32 %v214_v23, %v134_v21  ;;  %v847_v32 = vpop.f32.mrb[3].mxu0 }
 0x1b4   :  { %vm224_vm5 = vcmp.gt.f32.partialorder %v220_v22, 0.0  ;;  %v226_v25 = vmul.f32 0.2, %v220_v22 }
 0x1b5   :  { %vm223_vm6 = vcmp.gt.f32.partialorder %v215_v24, 0.0  ;;  %v225_v26 = vmul.f32 0.2, %v215_v24 }
 0x1b6   :  { %v228_v27 = vsel %vm224_vm5, %v220_v22, %v226_v25 }
 0x1b7   :  { %v227_v28 = vsel %vm223_vm6, %v215_v24, %v225_v26 }
 0x1b8   :  { %v881_v29 = vpack.c.bf16 %v228_v27, %v227_v28 }
 0x1ba   :  { %882 = vmatpush3.bf16.msra.mxu1 %v881_v29 }
 0x1bb   :  { %860 = vmatprep.subr.mxu1 %v889_v0 }
 0x1bd   :  { %853 = vmatmul.mubr.msk.f32.vlgmr.msra.gmra.mrb[2].mxu1 %vm304_vm7, %v229_v30 }
 0x1be   :  { %861 = vmatpush3.msk.msra.mxu1 %vm50_vm0, %v957_v1  ;;  %862 = vmatprep.mubr.msk.f32.mxu1 %vm890_vm2, %v889_v0 }
 0x1bf   :  { %870 = vmatprep.subr.mxu1 %v889_v0 }
 0x1c1   :  { %863 = vmatmul.mubr.msk.f32.vlgmr.msra.gmra.mrb[4].mxu1 %vm46_vm1, %v466_v33 }
 0x1c2   :  { %872 = vmatprep.mubr.msk.f32.mxu1 %vm890_vm2, %v889_v0  ;;  %871 = vmatpush3.msk.msra.mxu1 %vm50_vm0, %v805_v34 }
 0x1c5   :  { %873 = vmatmul.mubr.msk.f32.vlgmr.msra.gmra.mrb[6].mxu1 %vm46_vm1, %v624_v35 }
 0x290   :  { %v374_v36 = vpop.f32.mrb[2].mxu1 }
 0x291   :  { %v375_v37 = vadd.f32 %v374_v36, %v300_v31  ;;  %v854_v38 = vpop.f32.mrb[3].mxu1 }
 0x293   :  { %v384_v40 = vadd.f32 %v382_v39, %v375_v37 }
 0x294   :  { %v536_v47 = vpop.f32.mrb[4].mxu1 }
 0x295   :  { %v385_v41 = vmax.f32 %v384_v40, 0.0  ;;  %v864_v48 = vpop.f32.mrb[5].mxu1 }
 0x297   :  { %856 = vmatpush3.msra.mxu0 %v385_v41 }
 0x298   :  { %858 = vmatmul.mubr.msk.f32.vlgmr.msra.gmra.mrb[4].mxu0 %vm141_vm3, %v386_v42  ;;  %865 = vmatprep.subr.mxu0 %v889_v0  ;;  %v699_v49 = vpop.f32.mrb[6].mxu1 }
 0x299   :  { %866 = vmatpush3.msk.msra.mxu0 %vm50_vm0, %v801_v43  ;;  %867 = vmatprep.mubr.msk.f32.mxu0 %vm890_vm2, %v889_v0  ;;  %v874_v50 = vpop.f32.mrb[7].mxu1 }
 0x29a   :  { %875 = vmatprep.subr.mxu0 %v889_v0 }
 0x29c   :  { %868 = vmatmul.mubr.msk.f32.vlgmr.msra.gmra.mrb[6].mxu0 %vm46_vm1, %v542_v44 }
 0x29d   :  { %876 = vmatpush3.msk.msra.mxu0 %vm50_vm0, %v809_v45  ;;  %877 = vmatprep.mubr.msk.f32.mxu0 %vm890_vm2, %v889_v0 }
 0x2a0   :  { %878 = vmatmul.mubr.msk.f32.vlgmr.msra.gmra.mrb[8].mxu0 %vm46_vm1, %v706_v46 }
 0x36b   :  { %v462_v52 = vpop.f32.mrb[4].mxu0 }
 0x36c   :  { %v463_v53 = vadd.f32 %v462_v52, %v391_v51  ;;  %v859_v54 = vpop.f32.mrb[5].mxu0 }
 0x36e   :  { %v540_v55 = vadd.f32 %v536_v47, %v463_v53  ;;  %v703_v56 = vadd.f32 %v699_v49, %v463_v53 }
 0x36f   :  { %v617_v57 = vpop.f32.mrb[6].mxu0 }
 0x370   :  { %541 = vst [vmem:[%s1074_s11] sm:$0xf] %v540_v55  ;;  %808 = vst [vmem:[%s1074_s11 + $0x8] sm:$0xf] %v703_v56  ;;  %v621_v58 = vadd.f32 %v617_v57, %v463_v53  ;;  %v869_v59 = vpop.f32.mrb[7].mxu0 }
 0x372   :  { %804 = vst [vmem:[%s1074_s11 + $0x4] sm:$0xf] %v621_v58 }
 0x373   :  { %v781_v60 = vpop.f32.mrb[8].mxu0 }
 0x374   :  { %v785_v61 = vadd.f32 %v781_v60, %v463_v53  ;;  %v879_v62 = vpop.f32.mrb[9].mxu0 }
 0x376   :  { %812 = vst [vmem:[%s1074_s11 + $0xc] sm:$0xf] %v785_v61 }

</bundles_post_ra>
